<compile_context>
chip_gen: v6e
topology: v6e:2x2x1
jax: 0.10.0
libtpu: 0.0.40
codegen_flags: <defaults>
</compile_context>

<pallas_src>
import numpy as np
import jax
import jax.numpy as jnp
from jax.experimental import pallas as pl
from jax.experimental.pallas import tpu as pltpu

# ----------------------------------------------------------------------------
# Model hyper-parameters (consistent with the PyTorch module's __init__)
# ----------------------------------------------------------------------------
N_BINS = 3
CARDS = (3, 4)                       # one categorical head per card
N_CATS = len(CARDS)
N_NUMS = 3
IN_FEATURES = N_BINS + N_CATS + N_NUMS       # 8
HIDDEN = 32
BOTTLENECK = 16
NUM_LAYERS = 4                       # -> 2 encoder layers, 1 decoder layer
BATCH = 8

ENC_LAYERS = NUM_LAYERS >> 1
DEC_LAYERS = NUM_LAYERS - ENC_LAYERS - 1
NC_OFF = N_BINS + N_CATS             # offset of numeric columns inside x

LANE = 128                           # TPU lane width for the hidden/weight tiles

# Fused output-head column layout inside the output slab
HEAD_SIZES = (N_BINS,) + CARDS + (N_NUMS,)
_cum = np.cumsum((0,) + HEAD_SIZES)
BINS_OFF = int(_cum[0])
CAT_OFFS = tuple(int(_cum[1 + i]) for i in range(len(CARDS)))
NUMS_OFF = int(_cum[1 + len(CARDS)])
HEAD_DIM = int(_cum[-1])             # 13
HEAD_PAD = 16                        # output slab lanes (13 padded up to 16)
assert HEAD_DIM <= HEAD_PAD <= LANE

# Packed layer order: [enc0, enc1, ..., bottleneck, dec..., fused_heads]
N_MATS = ENC_LAYERS + 1 + DEC_LAYERS + 1                      # 5
RELU_FLAGS = (True,) * ENC_LAYERS + (False,) + (True,) * DEC_LAYERS   # trunk only


# ----------------------------------------------------------------------------
# Pallas kernel: full forward pass (trunk matmuls + relus + fused heads + clamp)
# ----------------------------------------------------------------------------
def _deapstack_kernel(x_ref, w0_ref, w_ref, b_ref, clamp_ref, out_ref):
    # x_ref     : (TILE_B, IN_FEATURES) bf16
    # w0_ref    : (IN_FEATURES, 128)    bf16   first trunk layer (enc0)
    # w_ref     : (N_MATS-1, 128, 128)  bf16   remaining trunk layers + fused head
    # b_ref     : (N_MATS, 1, 128)      f32    all biases
    # clamp_ref : (2, HEAD_PAD)         f32    row0 = lower bound, row1 = upper
    # out_ref   : (TILE_B, HEAD_PAD)    f32

    # enc0: small-K matmul (K = IN_FEATURES); bf16 operands, f32 accumulation.
    h = jnp.dot(x_ref[...], w0_ref[...],
                preferred_element_type=jnp.float32) + b_ref[0]
    h = jnp.maximum(h, 0.0)                                  # enc0 has ReLU

    # Remaining trunk: enc1.. (ReLU) -> bottleneck (no act) -> dec.. (ReLU).
    # Element-wise work stays in f32; h is downcast to bf16 only at the dot.
    for k in range(1, N_MATS - 1):
        h = jnp.dot(h.astype(jnp.bfloat16), w_ref[k - 1],
                    preferred_element_type=jnp.float32) + b_ref[k]
        if RELU_FLAGS[k]:
            h = jnp.maximum(h, 0.0)

    # Fused output heads (bins | cat0 | cat1 | nums) in one matmul.
    y = jnp.dot(h.astype(jnp.bfloat16), w_ref[N_MATS - 2],
                preferred_element_type=jnp.float32) + b_ref[N_MATS - 1]
    y = y[:, :HEAD_PAD]                                      # slim writeback slab

    # Clamp: only the numeric-head lanes carry finite bounds (-inf/+inf elsewhere).
    lo = clamp_ref[0:1, :]
    hi = clamp_ref[1:2, :]
    y = jnp.where(y < lo, lo, y)
    y = jnp.where(y > hi, hi, y)

    out_ref[...] = y


# ----------------------------------------------------------------------------
# One-time parameter packing (outside jit): transpose, fuse heads, pad, stack.
# ----------------------------------------------------------------------------
def pack_params(params):
    def pad_w(w_t, rows=LANE):                               # w_t: (in, out)
        out = np.zeros((rows, LANE), np.float32)
        out[: w_t.shape[0], : w_t.shape[1]] = w_t
        return out

    def pad_b(b):
        out = np.zeros((1, LANE), np.float32)
        out[0, : b.shape[0]] = b
        return out

    trunk = ([f"enc{i}" for i in range(ENC_LAYERS)] + ["bottleneck"]
             + [f"dec{i}" for i in range(DEC_LAYERS)])

    # First trunk layer (enc0) kept separate so x never needs 128-lane padding.
    w0_np, b0_np = params[trunk[0]]
    w0 = pad_w(np.asarray(w0_np, np.float32).T, rows=IN_FEATURES)   # (8, 128)
    b_list = [pad_b(np.asarray(b0_np, np.float32))]

    w_list = []
    for name in trunk[1:]:
        w, b = params[name]
        w_list.append(pad_w(np.asarray(w, np.float32).T))
        b_list.append(pad_b(np.asarray(b, np.float32)))

    # Fused head: concat bins | cat0 | cat1 | nums along the output-column axis.
    head_names = ["bins"] + [f"cat{i}" for i in range(len(CARDS))] + ["nums"]
    w_head = np.concatenate([np.asarray(params[n][0], np.float32).T for n in head_names], axis=1)
    b_head = np.concatenate([np.asarray(params[n][1], np.float32) for n in head_names], axis=0)
    w_list.append(pad_w(w_head))
    b_list.append(pad_b(b_head))

    # bf16 weights (MXU-native on v5e/v6e/v7x); f32 biases.
    w0 = jnp.asarray(w0, dtype=jnp.bfloat16)                         # (8, 128)
    w_packed = jnp.asarray(np.stack(w_list, axis=0), dtype=jnp.bfloat16)  # (N_MATS-1, 128, 128)
    b_packed = jnp.asarray(np.stack(b_list, axis=0))                 # (N_MATS, 1, 128) f32
    return w0, w_packed, b_packed


def _tiling(batch):
    """Pick a balanced batch tile (multiple of 16 for bf16 sublane packing)."""
    b16 = ((max(batch, 1) + 15) // 16) * 16
    MAX_TILE = 2048
    steps = max(1, -(-b16 // MAX_TILE))
    # v7x megacore balance: once the batch is big enough, use an even number of
    # >= 2 grid steps so both TensorCores get (equal) work.
    if b16 >= 512:
        steps = max(steps, 2)
        if steps % 2:
            steps += 1
    tile = -(-b16 // steps)
    tile = ((tile + 15) // 16) * 16
    b_pad = -(-b16 // tile) * tile
    return b_pad, tile


# ----------------------------------------------------------------------------
# Jitted wrapper
# ----------------------------------------------------------------------------
@jax.jit
def deapstack_forward(x, w0, w_packed, b_packed):
    """x: (B, IN_FEATURES). Returns {'bins','cats','nums'} like DeapStack.forward."""
    B = x.shape[0]
    x = x.astype(jnp.float32)

    # Whole-batch min/max of the numeric input columns (torch.min/max over dim=0).
    # Computed here (not in the kernel) so the batch dimension can be tiled safely.
    num_cols = x[:, NC_OFF:NC_OFF + N_NUMS]
    num_min = jnp.min(num_cols, axis=0)
    num_max = jnp.max(num_cols, axis=0)
    lo = jnp.full((HEAD_PAD,), -jnp.inf, jnp.float32).at[NUMS_OFF:NUMS_OFF + N_NUMS].set(num_min)
    hi = jnp.full((HEAD_PAD,), jnp.inf, jnp.float32).at[NUMS_OFF:NUMS_OFF + N_NUMS].set(num_max)
    clamp = jnp.stack([lo, hi], axis=0)                      # (2, HEAD_PAD)

    # Row-padded bf16 input (no lane padding): (B_pad, IN_FEATURES).
    B_pad, tile_b = _tiling(B)
    xp = x.astype(jnp.bfloat16)
    if B_pad != B:
        xp = jnp.pad(xp, ((0, B_pad - B), (0, 0)))

    grid_spec = pltpu.PrefetchScalarGridSpec(
        num_scalar_prefetch=0,
        grid=(B_pad // tile_b,),
        in_specs=[
            pl.BlockSpec((tile_b, IN_FEATURES), lambda i: (i, 0)),             # x tile
            pl.BlockSpec((IN_FEATURES, LANE), lambda i: (0, 0)),               # enc0 weight (resident)
            pl.BlockSpec((N_MATS - 1, LANE, LANE), lambda i: (0, 0, 0)),       # packed weights (resident)
            pl.BlockSpec((N_MATS, 1, LANE), lambda i: (0, 0, 0)),              # packed biases (resident)
            pl.BlockSpec((2, HEAD_PAD), lambda i: (0, 0)),                     # clamp rows (resident)
        ],
        out_specs=pl.BlockSpec((tile_b, HEAD_PAD), lambda i: (i, 0)),          # slim fused output
    )

    out_slab = pl.pallas_call(
        _deapstack_kernel,
        out_shape=jax.ShapeDtypeStruct((B_pad, HEAD_PAD), jnp.float32),
        grid_spec=grid_spec,
        compiler_params=pltpu.CompilerParams(dimension_semantics=("parallel",)),
    )(xp, w0, w_packed, b_packed, clamp)

    out = out_slab[:B]
    return {
        "bins": out[:, BINS_OFF:BINS_OFF + N_BINS],
        "cats": [out[:, off:off + card] for off, card in zip(CAT_OFFS, CARDS)],
        "nums": out[:, NUMS_OFF:NUMS_OFF + N_NUMS],
    }


# ----------------------------------------------------------------------------
# Deterministic parameter construction + pure-JAX reference
# ----------------------------------------------------------------------------
def make_params(key):
    """Weights in torch Linear convention: weight (out, in), bias (out,)."""
    shapes = {}
    for i in range(ENC_LAYERS):
        shapes[f"enc{i}"] = (HIDDEN, IN_FEATURES if i == 0 else HIDDEN)
    shapes["bottleneck"] = (BOTTLENECK, HIDDEN)
    for i in range(DEC_LAYERS):
        shapes[f"dec{i}"] = (HIDDEN, BOTTLENECK if i == 0 else HIDDEN)
    shapes["bins"] = (N_BINS, HIDDEN)
    for i, card in enumerate(CARDS):
        shapes[f"cat{i}"] = (card, HIDDEN)
    shapes["nums"] = (N_NUMS, HIDDEN)

    params = {}
    for name, (out_f, in_f) in shapes.items():
        key, kw, kb = jax.random.split(key, 3)
        bound = 1.0 / np.sqrt(in_f)
        w = jax.random.uniform(kw, (out_f, in_f), jnp.float32, -bound, bound)
        b = jax.random.uniform(kb, (out_f,), jnp.float32, -bound, bound)
        params[name] = (w, b)
    return params


def reference_forward(x, params):
    """Plain-JAX (f32) replica of DeapStack.forward for verification."""
    def lin(h, name):
        w, b = params[name]
        return h @ w.T + b

    num_cols = x[:, NC_OFF:NC_OFF + N_NUMS]
    num_min = jnp.min(num_cols, axis=0)
    num_max = jnp.max(num_cols, axis=0)

    h = x
    for i in range(ENC_LAYERS):
        h = jax.nn.relu(lin(h, f"enc{i}"))
    h = lin(h, "bottleneck")
    for i in range(DEC_LAYERS):
        h = jax.nn.relu(lin(h, f"dec{i}"))

    out = {
        "bins": lin(h, "bins"),
        "cats": [lin(h, f"cat{i}") for i in range(len(CARDS))],
    }
    nums = lin(h, "nums")
    nums = jnp.where(nums < num_min[None, :], num_min[None, :], nums)
    nums = jnp.where(nums > num_max[None, :], num_max[None, :], nums)
    out["nums"] = nums
    return out


def _check(out, ref, rtol=2e-2, atol=2e-2):
    # bf16 MXU operands vs f32 reference -> loosened tolerances (per review).
    np.testing.assert_allclose(np.asarray(out["bins"]), np.asarray(ref["bins"]), rtol=rtol, atol=atol)
    for a, b in zip(out["cats"], ref["cats"]):
        np.testing.assert_allclose(np.asarray(a), np.asarray(b), rtol=rtol, atol=atol)
    np.testing.assert_allclose(np.asarray(out["nums"]), np.asarray(ref["nums"]), rtol=rtol, atol=atol)


if __name__ == "__main__":
    key = jax.random.PRNGKey(0)
    key, kx = jax.random.split(key)
    params = make_params(key)

    # One-time packing outside the jitted forward (no per-call transpose/concat/cast).
    w0, w_packed, b_packed = pack_params(params)

    # Tiny demo batch (grid=(1,)) — in production prefer plain XLA for B < ~256.
    x_small = jax.random.normal(kx, (BATCH, IN_FEATURES), jnp.float32)
    out_small = deapstack_forward(x_small, w0, w_packed, b_packed)
    jax.block_until_ready(out_small)
    _check(out_small, reference_forward(x_small, params))

    # Multi-tile batch: exercises balanced tiling, row padding and the 2-step
    # parallel grid (megacore sharding on v7x).
    key, kx2 = jax.random.split(key)
    x_big = jax.random.normal(kx2, (600, IN_FEATURES), jnp.float32)
    out_big = deapstack_forward(x_big, w0, w_packed, b_packed)
    jax.block_until_ready(out_big)
    _check(out_big, reference_forward(x_big, params))

    print("KERNEL_OK")
</pallas_src>

<mosaic_0001>
module attributes {stable_mosaic.version = 11 : i64} {
  func.func @_deapstack_kernel(%arg0: i32, %arg1: memref<16x8xbf16, #tpu.memory_space<vmem>>, %arg2: memref<8x128xbf16, #tpu.memory_space<vmem>>, %arg3: memref<4x128x128xbf16, #tpu.memory_space<vmem>>, %arg4: memref<5x1x128xf32, #tpu.memory_space<vmem>>, %arg5: memref<2x16xf32, #tpu.memory_space<vmem>>, %arg6: memref<16x16xf32, #tpu.memory_space<vmem>>) attributes {dimension_semantics = [#tpu.dimension_semantics<parallel>], iteration_bounds = array<i64: 1>, scalar_prefetch = 0 : i64, scratch_operands = 0 : i64, tpu.core_type = #tpu.core_type<tc>, window_params = [{transform_indices = @transform_0, window_bounds = array<i64: 16, 8>}, {pipeline_mode = #tpu.pipeline_mode<synchronous>, transform_indices = @transform_1, window_bounds = array<i64: 8, 128>}, {pipeline_mode = #tpu.pipeline_mode<synchronous>, transform_indices = @transform_2, window_bounds = array<i64: 4, 128, 128>}, {pipeline_mode = #tpu.pipeline_mode<synchronous>, transform_indices = @transform_3, window_bounds = array<i64: 5, 1, 128>}, {pipeline_mode = #tpu.pipeline_mode<synchronous>, transform_indices = @transform_4, window_bounds = array<i64: 2, 16>}, {transform_indices = @transform_5, window_bounds = array<i64: 16, 16>}]} {
    %c0 = arith.constant 0 : index
    %c0_0 = arith.constant 0 : index
    %0 = vector.load %arg1[%c0, %c0_0] : memref<16x8xbf16, #tpu.memory_space<vmem>>, vector<16x8xbf16>
    %c0_1 = arith.constant 0 : index
    %c0_2 = arith.constant 0 : index
    %1 = vector.load %arg2[%c0_1, %c0_2] : memref<8x128xbf16, #tpu.memory_space<vmem>>, vector<8x128xbf16>
    %cst = arith.constant dense<0.000000e+00> : vector<16x128xf32>
    %2 = tpu.matmul %0, %1, %cst {dimension_numbers = #tpu.dot_dimension_numbers<[1], [0], [0], [1], [0, 0, 1, 1], [], []>} : vector<16x8xbf16>, vector<8x128xbf16>, vector<16x128xf32> -> vector<16x128xf32>
    %c0_3 = arith.constant 0 : index
    %c0_4 = arith.constant 0 : index
    %c0_5 = arith.constant 0 : index
    %3 = vector.load %arg4[%c0_3, %c0_4, %c0_5] : memref<5x1x128xf32, #tpu.memory_space<vmem>>, vector<1x1x128xf32>
    %4 = vector.shape_cast %3 : vector<1x1x128xf32> to vector<1x128xf32>
    %5 = vector.broadcast %4 : vector<1x128xf32> to vector<16x128xf32>
    %6 = arith.addf %2, %5 : vector<16x128xf32>
    %cst_6 = arith.constant 0.000000e+00 : f32
    %7 = vector.broadcast %cst_6 : f32 to vector<16x128xf32>
    %8 = arith.maximumf %6, %7 : vector<16x128xf32>
    %9 = arith.truncf %8 : vector<16x128xf32> to vector<16x128xbf16>
    %c0_7 = arith.constant 0 : index
    %c0_8 = arith.constant 0 : index
    %c0_9 = arith.constant 0 : index
    %10 = vector.load %arg3[%c0_7, %c0_8, %c0_9] : memref<4x128x128xbf16, #tpu.memory_space<vmem>>, vector<1x128x128xbf16>
    %11 = vector.shape_cast %10 : vector<1x128x128xbf16> to vector<128x128xbf16>
    %cst_10 = arith.constant dense<0.000000e+00> : vector<16x128xf32>
    %12 = tpu.matmul %9, %11, %cst_10 {dimension_numbers = #tpu.dot_dimension_numbers<[1], [0], [0], [1], [0, 0, 1, 1], [], []>} : vector<16x128xbf16>, vector<128x128xbf16>, vector<16x128xf32> -> vector<16x128xf32>
    %c1 = arith.constant 1 : index
    %c0_11 = arith.constant 0 : index
    %c0_12 = arith.constant 0 : index
    %13 = vector.load %arg4[%c1, %c0_11, %c0_12] : memref<5x1x128xf32, #tpu.memory_space<vmem>>, vector<1x1x128xf32>
    %14 = vector.shape_cast %13 : vector<1x1x128xf32> to vector<1x128xf32>
    %15 = vector.broadcast %14 : vector<1x128xf32> to vector<16x128xf32>
    %16 = arith.addf %12, %15 : vector<16x128xf32>
    %cst_13 = arith.constant 0.000000e+00 : f32
    %17 = vector.broadcast %cst_13 : f32 to vector<16x128xf32>
    %18 = arith.maximumf %16, %17 : vector<16x128xf32>
    %19 = arith.truncf %18 : vector<16x128xf32> to vector<16x128xbf16>
    %c1_14 = arith.constant 1 : index
    %c0_15 = arith.constant 0 : index
    %c0_16 = arith.constant 0 : index
    %20 = vector.load %arg3[%c1_14, %c0_15, %c0_16] : memref<4x128x128xbf16, #tpu.memory_space<vmem>>, vector<1x128x128xbf16>
    %21 = vector.shape_cast %20 : vector<1x128x128xbf16> to vector<128x128xbf16>
    %cst_17 = arith.constant dense<0.000000e+00> : vector<16x128xf32>
    %22 = tpu.matmul %19, %21, %cst_17 {dimension_numbers = #tpu.dot_dimension_numbers<[1], [0], [0], [1], [0, 0, 1, 1], [], []>} : vector<16x128xbf16>, vector<128x128xbf16>, vector<16x128xf32> -> vector<16x128xf32>
    %c2 = arith.constant 2 : index
    %c0_18 = arith.constant 0 : index
    %c0_19 = arith.constant 0 : index
    %23 = vector.load %arg4[%c2, %c0_18, %c0_19] : memref<5x1x128xf32, #tpu.memory_space<vmem>>, vector<1x1x128xf32>
    %24 = vector.shape_cast %23 : vector<1x1x128xf32> to vector<1x128xf32>
    %25 = vector.broadcast %24 : vector<1x128xf32> to vector<16x128xf32>
    %26 = arith.addf %22, %25 : vector<16x128xf32>
    %27 = arith.truncf %26 : vector<16x128xf32> to vector<16x128xbf16>
    %c2_20 = arith.constant 2 : index
    %c0_21 = arith.constant 0 : index
    %c0_22 = arith.constant 0 : index
    %28 = vector.load %arg3[%c2_20, %c0_21, %c0_22] : memref<4x128x128xbf16, #tpu.memory_space<vmem>>, vector<1x128x128xbf16>
    %29 = vector.shape_cast %28 : vector<1x128x128xbf16> to vector<128x128xbf16>
    %cst_23 = arith.constant dense<0.000000e+00> : vector<16x128xf32>
    %30 = tpu.matmul %27, %29, %cst_23 {dimension_numbers = #tpu.dot_dimension_numbers<[1], [0], [0], [1], [0, 0, 1, 1], [], []>} : vector<16x128xbf16>, vector<128x128xbf16>, vector<16x128xf32> -> vector<16x128xf32>
    %c3 = arith.constant 3 : index
    %c0_24 = arith.constant 0 : index
    %c0_25 = arith.constant 0 : index
    %31 = vector.load %arg4[%c3, %c0_24, %c0_25] : memref<5x1x128xf32, #tpu.memory_space<vmem>>, vector<1x1x128xf32>
    %32 = vector.shape_cast %31 : vector<1x1x128xf32> to vector<1x128xf32>
    %33 = vector.broadcast %32 : vector<1x128xf32> to vector<16x128xf32>
    %34 = arith.addf %30, %33 : vector<16x128xf32>
    %cst_26 = arith.constant 0.000000e+00 : f32
    %35 = vector.broadcast %cst_26 : f32 to vector<16x128xf32>
    %36 = arith.maximumf %34, %35 : vector<16x128xf32>
    %37 = arith.truncf %36 : vector<16x128xf32> to vector<16x128xbf16>
    %c3_27 = arith.constant 3 : index
    %c0_28 = arith.constant 0 : index
    %c0_29 = arith.constant 0 : index
    %38 = vector.load %arg3[%c3_27, %c0_28, %c0_29] : memref<4x128x128xbf16, #tpu.memory_space<vmem>>, vector<1x128x128xbf16>
    %39 = vector.shape_cast %38 : vector<1x128x128xbf16> to vector<128x128xbf16>
    %cst_30 = arith.constant dense<0.000000e+00> : vector<16x128xf32>
    %40 = tpu.matmul %37, %39, %cst_30 {dimension_numbers = #tpu.dot_dimension_numbers<[1], [0], [0], [1], [0, 0, 1, 1], [], []>} : vector<16x128xbf16>, vector<128x128xbf16>, vector<16x128xf32> -> vector<16x128xf32>
    %c4 = arith.constant 4 : index
    %c0_31 = arith.constant 0 : index
    %c0_32 = arith.constant 0 : index
    %41 = vector.load %arg4[%c4, %c0_31, %c0_32] : memref<5x1x128xf32, #tpu.memory_space<vmem>>, vector<1x1x128xf32>
    %42 = vector.shape_cast %41 : vector<1x1x128xf32> to vector<1x128xf32>
    %43 = vector.broadcast %42 : vector<1x128xf32> to vector<16x128xf32>
    %44 = arith.addf %40, %43 : vector<16x128xf32>
    %45 = vector.extract_strided_slice %44 {offsets = [0, 0], sizes = [16, 16], strides = [1, 1]} : vector<16x128xf32> to vector<16x16xf32>
    %c0_33 = arith.constant 0 : index
    %c0_34 = arith.constant 0 : index
    %46 = vector.load %arg5[%c0_33, %c0_34] : memref<2x16xf32, #tpu.memory_space<vmem>>, vector<1x16xf32>
    %c1_35 = arith.constant 1 : index
    %c0_36 = arith.constant 0 : index
    %47 = vector.load %arg5[%c1_35, %c0_36] : memref<2x16xf32, #tpu.memory_space<vmem>>, vector<1x16xf32>
    %48 = vector.broadcast %46 : vector<1x16xf32> to vector<16x16xf32>
    %49 = arith.cmpf olt, %45, %48 : vector<16x16xf32>
    %50 = vector.shape_cast %46 : vector<1x16xf32> to vector<1x16xf32>
    %51 = vector.broadcast %50 : vector<1x16xf32> to vector<16x16xf32>
    %52 = arith.select %49, %51, %45 : vector<16x16xi1>, vector<16x16xf32>
    %53 = vector.broadcast %47 : vector<1x16xf32> to vector<16x16xf32>
    %54 = arith.cmpf ogt, %52, %53 : vector<16x16xf32>
    %55 = vector.shape_cast %47 : vector<1x16xf32> to vector<1x16xf32>
    %56 = vector.broadcast %55 : vector<1x16xf32> to vector<16x16xf32>
    %57 = arith.select %54, %56, %52 : vector<16x16xi1>, vector<16x16xf32>
    %c0_37 = arith.constant 0 : index
    %c0_38 = arith.constant 0 : index
    %58 = vector.load %arg6[%c0_37, %c0_38] : memref<16x16xf32, #tpu.memory_space<vmem>>, vector<16x16xf32>
    tpu.vector_store %arg6[%c0_37, %c0_38], %57 {strides = array<i32>} : memref<16x16xf32, #tpu.memory_space<vmem>>, vector<16x16xf32>,
    return
  }
  func.func @transform_0(%arg0: i32) -> (i32, i32) {
    %c0_i32 = arith.constant 0 : i32
    %c0_i32_0 = arith.constant 0 : i32
    return %arg0, %c0_i32 : i32, i32
  }
  func.func @transform_1(%arg0: i32) -> (i32, i32) {
    %c0_i32 = arith.constant 0 : i32
    %c0_i32_0 = arith.constant 0 : i32
    %c0_i32_1 = arith.constant 0 : i32
    return %c0_i32, %c0_i32_0 : i32, i32
  }
  func.func @transform_2(%arg0: i32) -> (i32, i32, i32) {
    %c0_i32 = arith.constant 0 : i32
    %c0_i32_0 = arith.constant 0 : i32
    %c0_i32_1 = arith.constant 0 : i32
    %c0_i32_2 = arith.constant 0 : i32
    return %c0_i32, %c0_i32_0, %c0_i32_1 : i32, i32, i32
  }
  func.func @transform_3(%arg0: i32) -> (i32, i32, i32) {
    %c0_i32 = arith.constant 0 : i32
    %c0_i32_0 = arith.constant 0 : i32
    %c0_i32_1 = arith.constant 0 : i32
    %c0_i32_2 = arith.constant 0 : i32
    return %c0_i32, %c0_i32_0, %c0_i32_1 : i32, i32, i32
  }
  func.func @transform_4(%arg0: i32) -> (i32, i32) {
    %c0_i32 = arith.constant 0 : i32
    %c0_i32_0 = arith.constant 0 : i32
    %c0_i32_1 = arith.constant 0 : i32
    return %c0_i32, %c0_i32_0 : i32, i32
  }
  func.func @transform_5(%arg0: i32) -> (i32, i32) {
    %c0_i32 = arith.constant 0 : i32
    %c0_i32_0 = arith.constant 0 : i32
    return %arg0, %c0_i32 : i32, i32
  }
}

</mosaic_0001>

<bundles_post_ra>
// kernel: deapstack_forward.1
= control target key start
LH: loop header
LB: loop body
LE: loop exit
PB: predicated region body
PF: predicated region fallthrough
CT: control target
= control target key end

     0   :  { %10 = vsyncpa [#allocation3], 0  ;;  %s819_s18 = smov [#allocation2]   ;;  %s933_s0 = inlined_call_operand.vmem [shape: bf16[16,8], index: 0, kind: input, shape index: {}]   ;;  %s934_s1 = inlined_call_operand.vmem [shape: bf16[8,128], index: 1, kind: input, shape index: {}]   ;;  %s935_s2 = inlined_call_operand.hbm [shape: bf16[4,128,128], index: 2, kind: input, shape index: {}]   ;;  %s936_s3 = inlined_call_operand.vmem [shape: f32[5,1,128], index: 3, kind: input, shape index: {}]   ;;  %s937_s4 = inlined_call_operand.vmem [shape: f32[2,16], index: 4, kind: input, shape index: {}]   ;;  %s938_s5 = inlined_call_operand.vmem [shape: f32[16,16], index: 5, kind: output, shape index: {}]  }
   0x1   :  { %s20_s19 = sshll.u32 %s819_s18, 4  ;;  %s21_s19 = int_to_ptr.vmem [resolvable:$true] %s20_s19 }
   0x2   :  { %s805_s20 = scalar_lea.vmem %s21_s19, 4096  ;;  %p810_p1 = scmp.lt.s32.totalorder %s21_s19, %s21_s19 }
   0x3   :  { %p806_p0 = scmp.ne.s32.totalorder %s21_s19, %s805_s20  ;;  %p811_p2 = scmp.lt.s32.totalorder %s805_s20, %s805_s20 }
   0x5   :  { %p812_p3 = por %p811_p2, %p810_p1 }
   0x7   :  { %p813_p4 = pnand %p812_p3, %p806_p0 }
   0x9   :  { %816 = shalt.err (!%p813_p4)
}
   0xa   :  { %s820_s21 = smov 64   ;;  %s821_s22 = smov 4  }
   0xb   :  { %26 = dma.hbm_to_vmem [thread:$0]  %s935_s2, 4096, %s21_s19, [#allocation3], %s820_s21, %s820_s21, %s821_s22  }
   0xc   :  { %817 = dma.done.wait [#allocation3], 4096  }
   0xd   :  { %818 = vsyncadd [#allocation3], 4294963200  ;;  %v822_v0 = vmov 0.0   ;;  %vm823_vm0 = vmmov 0   ;;  %vm54_vm1 = vcmask 1043456   ;;  %v764_v3 = vld [vmem:[%s933_s0] sm:$0xff]  }
   0xe   :  { %673 = vmatprep.subr.bf16.mxu0 %v822_v0  ;;  %675 = vmatprep.mubr.msk.bf16.mxu0 %vm823_vm0, %v822_v0  ;;  %v37_v1 = vld [vmem:[%s934_s1] sm:$0xf]  ;;  %vm50_vm2 = vcmask 64512   ;;  %v765_v4 = vld [vmem:[#allocation2 + $0x38] sm:$0xff]   ;;  %v766_v5 = vld [vmem:[#allocation2 + $0x30] sm:$0xff]   ;;  %vm582_vm4 = vcmask 130048  }
   0xf   :  { %679 = vmatprep.subr.bf16.mxu1 %v822_v0  ;;  %695 = vmatprep.mubr.msk.bf16.mxu1 %vm823_vm0, %v822_v0  ;;  %v56_v2 = vsel %vm54_vm1, %v37_v1, 0  ;;  %v767_v6 = vld [vmem:[#allocation2 + $0x28] sm:$0xff]   ;;  %v768_v7 = vld [vmem:[#allocation2 + $0x20] sm:$0xff]   ;;  %v769_v8 = vld [vmem:[#allocation2 + $0x18] sm:$0xff]  }
  0x10   :  { %674 = vmatpush3.bf16.msra.mxu0 %v56_v2  ;;  %680 = vmatpush3.bf16.msra.mxu1 %v765_v4  ;;  %v770_v9 = vld [vmem:[#allocation2 + $0x10] sm:$0xff]   ;;  %v771_v10 = vld [vmem:[#allocation2 + $0x8] sm:$0xff]   ;;  %v772_v11 = vld [vmem:[#allocation2] sm:$0xff]  }
  0x11   :  { %699 = vmatprep.subr.bf16.mxu0 %v822_v0  ;;  %681 = vmatprep.subr.bf16.mxu1 %v822_v0  ;;  %v773_v12 = vld [vmem:[#allocation2 + $0x78] sm:$0xff]   ;;  %v774_v13 = vld [vmem:[#allocation2 + $0x70] sm:$0xff]   ;;  %v775_v14 = vld [vmem:[#allocation2 + $0x68] sm:$0xff]  }
  0x12   :  { %v776_v15 = vld [vmem:[#allocation2 + $0x60] sm:$0xff]   ;;  %v777_v16 = vld [vmem:[#allocation2 + $0x58] sm:$0xff]   ;;  %v778_v27 = vld [vmem:[#allocation2 + $0x50] sm:$0xff]  }
  0x13   :  { %676 = vmatmul.mubr.msk.bf16.vlgmr.msra.gmra.mxu0 %vm50_vm2, %v764_v3  ;;  %v590_v17 = vld [vmem:[%s936_s3] ss:$0 sm:$0xff]  ;;  %v779_v28 = vld [vmem:[#allocation2 + $0x48] sm:$0xff]   ;;  %v781_v30 = vld [vmem:[#allocation2 + $0xb8] sm:$0xff]  }
  0x14   :  { %715 = vmatprep.mubr.msk.bf16.mxu0 %vm823_vm0, %v822_v0  ;;  %682 = vmatpush3.bf16.msra.mxu1 %v766_v5  ;;  %v780_v29 = vld [vmem:[#allocation2 + $0x40] sm:$0xff]   ;;  %v782_v31 = vld [vmem:[#allocation2 + $0xb0] sm:$0xff]   ;;  %v783_v32 = vld [vmem:[#allocation2 + $0xa8] sm:$0xff]  }
  0x15   :  { %683 = vmatprep.subr.bf16.mxu1 %v822_v0  ;;  %700 = vmatpush3.bf16.msra.mxu0 %v773_v12  ;;  %v784_v33 = vld [vmem:[#allocation2 + $0xa0] sm:$0xff]   ;;  %v785_v34 = vld [vmem:[#allocation2 + $0x98] sm:$0xff]   ;;  %v786_v35 = vld [vmem:[#allocation2 + $0x90] sm:$0xff]  }
  0x16   :  { %701 = vmatprep.subr.bf16.mxu0 %v822_v0  ;;  %v594_v36 = vld [vmem:[%s936_s3 + $0x1] ss:$0 sm:$0xff]  ;;  %v787_v46 = vld [vmem:[#allocation2 + $0x88] sm:$0xff]   ;;  %v789_v48 = vld [vmem:[#allocation2 + $0xf8] sm:$0xff]  }
  0x17   :  { %v788_v47 = vld [vmem:[#allocation2 + $0x80] sm:$0xff]   ;;  %v790_v49 = vld [vmem:[#allocation2 + $0xf0] sm:$0xff]   ;;  %v791_v50 = vld [vmem:[#allocation2 + $0xe8] sm:$0xff]  }
  0x18   :  { %684 = vmatpush3.bf16.msra.mxu1 %v767_v6  ;;  %v792_v51 = vld [vmem:[#allocation2 + $0xe0] sm:$0xff]   ;;  %v793_v52 = vld [vmem:[#allocation2 + $0xd8] sm:$0xff]   ;;  %v794_v61 = vld [vmem:[#allocation2 + $0xd0] sm:$0xff]  }
  0x19   :  { %685 = vmatprep.subr.bf16.mxu1 %v822_v0  ;;  %702 = vmatpush3.bf16.msra.mxu0 %v774_v13  ;;  %v604_v54 = vld [vmem:[%s936_s3 + $0x2] ss:$0 sm:$0xff]  ;;  %v795_v62 = vld [vmem:[#allocation2 + $0xc8] sm:$0xff]   ;;  %v614_v1 = vld [vmem:[%s936_s3 + $0x3] ss:$0 sm:$0xff] }
  0x1a   :  { %703 = vmatprep.subr.bf16.mxu0 %v822_v0  ;;  %v796_v63 = vld [vmem:[#allocation2 + $0xc0] sm:$0xff]  }
  0x1b   :  { %v633_v12 = vld [vmem:[%s937_s4] ss:$0 sm:$0xff] }
  0x1c   :  { %686 = vmatpush3.bf16.msra.mxu1 %v768_v7 }
  0x1d   :  { %687 = vmatprep.subr.bf16.mxu1 %v822_v0  ;;  %704 = vmatpush3.bf16.msra.mxu0 %v775_v14  ;;  %v634_v14 = vld [vmem:[%s937_s4 + $0x1] ss:$0 sm:$0xff] }
  0x1e   :  { %705 = vmatprep.subr.bf16.mxu0 %v822_v0 }
  0x20   :  { %688 = vmatpush3.bf16.msra.mxu1 %v769_v8 }
  0x21   :  { %689 = vmatprep.subr.bf16.mxu1 %v822_v0  ;;  %706 = vmatpush3.bf16.msra.mxu0 %v776_v15 }
  0x22   :  { %707 = vmatprep.subr.bf16.mxu0 %v822_v0 }
  0x24   :  { %690 = vmatpush3.bf16.msra.mxu1 %v770_v9 }
  0x25   :  { %691 = vmatprep.subr.bf16.mxu1 %v822_v0  ;;  %708 = vmatpush3.bf16.msra.mxu0 %v777_v16 }
  0x26   :  { %709 = vmatprep.subr.bf16.mxu0 %v822_v0 }
  0x28   :  { %692 = vmatpush3.bf16.msra.mxu1 %v771_v10 }
  0x29   :  { %693 = vmatprep.subr.bf16.mxu1 %v822_v0  ;;  %710 = vmatpush3.bf16.msra.mxu0 %v778_v27 }
  0x2a   :  { %711 = vmatprep.subr.bf16.mxu0 %v822_v0 }
  0x2c   :  { %694 = vmatpush3.bf16.msra.mxu1 %v772_v11 }
  0x2d   :  { %719 = vmatprep.subr.bf16.mxu1 %v822_v0  ;;  %712 = vmatpush3.bf16.msra.mxu0 %v779_v28 }
  0x2e   :  { %713 = vmatprep.subr.bf16.mxu0 %v822_v0 }
  0x31   :  { %714 = vmatpush3.bf16.msra.mxu0 %v780_v29 }
  0x32   :  { %739 = vmatprep.subr.bf16.mxu0 %v822_v0 }
  0xd3   :  { %v92_v18 = vpop.f32.mrf.mxu0 }
  0xd4   :  { %v93_v20 = vadd.f32 %v590_v17, %v92_v18 }
  0xd5   :  { %v677_v19 = vpop.f32.mrf.mxu0 }
  0xd6   :  { %v99_v24 = vmax.f32 %v93_v20, 0.0 }
  0xd7   :  { %v95_v21 = vpop.f32.mrf.mxu0 }
  0xd8   :  { %v96_v22 = vadd.f32 %v590_v17, %v95_v21 }
  0xd9   :  { %v678_v23 = vpop.f32.mrf.mxu0 }
  0xda   :  { %v100_v25 = vmax.f32 %v96_v22, 0.0 }
  0xdc   :  { %v101_v26 = vpack.c.bf16 %v100_v25, %v99_v24 }
  0xde   :  { %696 = vmatmul.mubr.bf16.vlgmr.msra.gmra.mxu1 %v101_v26 }
  0xdf   :  { %735 = vmatprep.mubr.msk.bf16.mxu1 %vm823_vm0, %v822_v0  ;;  %720 = vmatpush3.bf16.msra.mxu1 %v781_v30 }
  0xe0   :  { %721 = vmatprep.subr.bf16.mxu1 %v822_v0 }
  0xe3   :  { %722 = vmatpush3.bf16.msra.mxu1 %v782_v31 }
  0xe4   :  { %723 = vmatprep.subr.bf16.mxu1 %v822_v0 }
  0xe7   :  { %724 = vmatpush3.bf16.msra.mxu1 %v783_v32 }
  0xe8   :  { %725 = vmatprep.subr.bf16.mxu1 %v822_v0 }
  0xeb   :  { %726 = vmatpush3.bf16.msra.mxu1 %v784_v33 }
  0xec   :  { %727 = vmatprep.subr.bf16.mxu1 %v822_v0 }
  0xef   :  { %728 = vmatpush3.bf16.msra.mxu1 %v785_v34 }
  0xf0   :  { %729 = vmatprep.subr.bf16.mxu1 %v822_v0 }
  0xf3   :  { %730 = vmatpush3.bf16.msra.mxu1 %v786_v35 }
  0xf4   :  { %731 = vmatprep.subr.bf16.mxu1 %v822_v0 }
  0xf7   :  { %732 = vmatpush3.bf16.msra.mxu1 %v787_v46 }
  0xf8   :  { %733 = vmatprep.subr.bf16.mxu1 %v822_v0 }
  0xfb   :  { %734 = vmatpush3.bf16.msra.mxu1 %v788_v47 }
 0x19e   :  { %v208_v37 = vpop.f32.mrf.mxu1 }
 0x19f   :  { %v209_v39 = vadd.f32 %v594_v36, %v208_v37 }
 0x1a0   :  { %v697_v38 = vpop.f32.mrf.mxu1 }
 0x1a1   :  { %v215_v43 = vmax.f32 %v209_v39, 0.0 }
 0x1a2   :  { %v211_v40 = vpop.f32.mrf.mxu1 }
 0x1a3   :  { %v212_v41 = vadd.f32 %v594_v36, %v211_v40 }
 0x1a4   :  { %v698_v42 = vpop.f32.mrf.mxu1 }
 0x1a5   :  { %v216_v44 = vmax.f32 %v212_v41, 0.0 }
 0x1a7   :  { %v217_v45 = vpack.c.bf16 %v216_v44, %v215_v43 }
 0x1a9   :  { %716 = vmatmul.mubr.bf16.vlgmr.msra.gmra.mxu0 %v217_v45 }
 0x1aa   :  { %755 = vmatprep.mubr.msk.bf16.mxu0 %vm823_vm0, %v822_v0  ;;  %740 = vmatpush3.bf16.msra.mxu0 %v789_v48 }
 0x1ab   :  { %741 = vmatprep.subr.bf16.mxu0 %v822_v0 }
 0x1ae   :  { %742 = vmatpush3.bf16.msra.mxu0 %v790_v49 }
 0x1af   :  { %743 = vmatprep.subr.bf16.mxu0 %v822_v0 }
 0x1b2   :  { %744 = vmatpush3.bf16.msra.mxu0 %v791_v50 }
 0x1b3   :  { %745 = vmatprep.subr.bf16.mxu0 %v822_v0 }
 0x1b6   :  { %746 = vmatpush3.bf16.msra.mxu0 %v792_v51 }
 0x1b7   :  { %747 = vmatprep.subr.bf16.mxu0 %v822_v0 }
 0x1ba   :  { %748 = vmatpush3.bf16.msra.mxu0 %v793_v52 }
 0x1bb   :  { %749 = vmatprep.subr.bf16.mxu0 %v822_v0 }
 0x1be   :  { %750 = vmatpush3.bf16.msra.mxu0 %v794_v61 }
 0x1bf   :  { %751 = vmatprep.subr.bf16.mxu0 %v822_v0 }
 0x1c2   :  { %752 = vmatpush3.bf16.msra.mxu0 %v795_v62 }
 0x1c3   :  { %753 = vmatprep.subr.bf16.mxu0 %v822_v0  ;;  %v624_v0 = vld [vmem:[%s936_s3 + $0x4] ss:$0 sm:$0xff] }
 0x1c6   :  { %754 = vmatpush3.bf16.msra.mxu0 %v796_v63 }
 0x269   :  { %v325_v53 = vpop.f32.mrf.mxu0 }
 0x26a   :  { %v326_v57 = vadd.f32 %v604_v54, %v325_v53 }
 0x26b   :  { %v717_v55 = vpop.f32.mrf.mxu0 }
 0x26d   :  { %v328_v56 = vpop.f32.mrf.mxu0 }
 0x26e   :  { %v329_v58 = vadd.f32 %v604_v54, %v328_v56 }
 0x26f   :  { %v718_v59 = vpop.f32.mrf.mxu0 }
 0x270   :  { %v332_v60 = vpack.c.bf16 %v329_v58, %v326_v57 }
 0x272   :  { %736 = vmatmul.mubr.bf16.vlgmr.msra.gmra.mxu1 %v332_v60 }
 0x332   :  { %v440_v2 = vpop.f32.mrf.mxu1 }
 0x333   :  { %v441_v4 = vadd.f32 %v614_v1, %v440_v2 }
 0x334   :  { %v737_v3 = vpop.f32.mrf.mxu1 }
 0x335   :  { %v447_v8 = vmax.f32 %v441_v4, 0.0 }
 0x336   :  { %v443_v5 = vpop.f32.mrf.mxu1 }
 0x337   :  { %v444_v6 = vadd.f32 %v614_v1, %v443_v5 }
 0x338   :  { %v738_v7 = vpop.f32.mrf.mxu1 }
 0x339   :  { %v448_v9 = vmax.f32 %v444_v6, 0.0 }
 0x33b   :  { %v449_v10 = vpack.c.bf16 %v448_v9, %v447_v8 }
 0x33d   :  { %756 = vmatmul.mubr.bf16.vlgmr.msra.gmra.mxu0 %v449_v10 }
 0x3fd   :  { %v557_v11 = vpop.f32.mrf.mxu0 }
 0x3fe   :  { %v558_v13 = vadd.f32 %v624_v0, %v557_v11 }
 0x3ff   :  { %v757_v15 = vpop.f32.mrf.mxu0 }
 0x400   :  { %vm570_vm3 = vcmp.lt.f32.partialorder %v558_v13, %v633_v12 }
 0x401   :  { %v572_v16 = vsel %vm570_vm3, %v633_v12, %v558_v13  ;;  %v560_v17 = vpop.f32.mrf.mxu0 }
 0x402   :  { %vm578_vm5 = vcmp.gt.f32.partialorder %v572_v16, %v634_v14  ;;  %v561_v18 = vadd.f32 %v624_v0, %v560_v17 }
 0x403   :  { %v580_v19 = vsel %vm578_vm5, %v634_v14, %v572_v16  ;;  %v758_v20 = vpop.f32.mrf.mxu0 }
 0x404   :  { %583 = vst.msk [vmem:[%s938_s5] sm:$0xff] %vm582_vm4, %v580_v19  ;;  %vm571_vm6 = vcmp.lt.f32.partialorder %v561_v18, %v633_v12 }
 0x405   :  { %v573_v21 = vsel %vm571_vm6, %v633_v12, %v561_v18 }
 0x406   :  { %vm579_vm7 = vcmp.gt.f32.partialorder %v573_v21, %v634_v14 }
 0x407   :  { %v581_v22 = vsel %vm579_vm7, %v634_v14, %v573_v21 }
 0x408   :  { %584 = vst.msk [vmem:[%s938_s5 + $0x8] sm:$0xff] %vm582_vm4, %v581_v22 }
 0x409   :  { %589 = vsyncpa [#allocation3], 1 }

</bundles_post_ra>
